<compile_context>
chip_gen: v7x
topology: tpu7x:2x2x1
jax: 0.10.0
libtpu: 0.0.40
codegen_flags: <defaults>
</compile_context>

<pallas_src>
import functools

import jax
import jax.numpy as jnp
from jax.experimental import pallas as pl
from jax.experimental.pallas import tpu as pltpu


def _layernorm_kernel(x_ref, gamma_ref, beta_ref, o_ref, *, eps, features):
    # x_ref: (tile_rows, features); gamma/beta: (1, features)
    x = x_ref[...].astype(jnp.float32)
    n = jnp.float32(features)

    # One-pass moments: sum and sum-of-squares in parallel, then derive
    # mean / unbiased variance. Clamp tiny negative fp error before sqrt.
    s = jnp.sum(x, axis=-1, keepdims=True)
    sq = jnp.sum(x * x, axis=-1, keepdims=True)
    mean = s / n
    var = jnp.maximum((sq - s * mean) / jnp.float32(features - 1), 0.0)
    std = jnp.sqrt(var)

    # Per-row reciprocal (tile_rows x 1) + broadcast multiply instead of a
    # full-tile divide. approx=False keeps full precision; the cost is
    # negligible since it is one value per row.
    inv = pl.reciprocal(std + jnp.float32(eps), approx=False)

    gamma = gamma_ref[...].astype(jnp.float32)
    beta = beta_ref[...].astype(jnp.float32)
    o_ref[...] = (gamma * ((x - mean) * inv) + beta).astype(o_ref.dtype)


def _pick_tile_rows(rows, features, dtype_bytes,
                    vmem_budget_bytes=16 << 20, max_rows=1024):
    """Largest row tile whose (in + out) double-buffered tiles fit the budget."""
    bytes_per_row = features * dtype_bytes * 2 * 2  # (1 in + 1 out) x 2 buffers
    t = vmem_budget_bytes // max(bytes_per_row, 1)
    t = max(8, min(int(t), max_rows))
    return t


def layer_norm(x, gamma, beta, *, eps=1e-6, tile_rows=None):
    """LayerNorm over the last axis of x. gamma/beta: (features,)."""
    features = x.shape[-1]
    assert features > 1, "unbiased std (N-1) requires features > 1"
    assert gamma.shape == (features,) and beta.shape == (features,)

    orig_shape = x.shape
    rows = 1
    for d in orig_shape[:-1]:
        rows *= d
    x2 = x.reshape(rows, features)

    dtype_bytes = jnp.dtype(x.dtype).itemsize
    if tile_rows is None:
        tile_rows = _pick_tile_rows(rows, features, dtype_bytes)

    if tile_rows >= rows:
        # Single block covering all rows (block dim == full array dim is
        # always legal, regardless of 8-divisibility).
        tile_rows = rows
    else:
        # Keep the sublane dim a multiple of 8; Pallas handles the ragged
        # last block, so no input padding / extra HBM pass is needed.
        tile_rows = max(8, (tile_rows // 8) * 8)

    grid = (pl.cdiv(rows, tile_rows),)

    # NOTE: features < 128 (as in the demo) under-fills vreg lanes; the module
    # contract fixes the feature axis as the lane axis, so we keep it as-is.
    gamma2 = gamma.reshape(1, features)
    beta2 = beta.reshape(1, features)

    kernel = functools.partial(_layernorm_kernel, eps=eps, features=features)

    cost = pl.CostEstimate(
        flops=8 * rows * features,
        transcendentals=2 * rows,  # sqrt + reciprocal per row
        bytes_accessed=(2 * rows * features + 2 * features) * dtype_bytes,
    )

    out = pl.pallas_call(
        kernel,
        out_shape=jax.ShapeDtypeStruct((rows, features), x.dtype),
        grid_spec=pltpu.PrefetchScalarGridSpec(
            num_scalar_prefetch=0,
            grid=grid,
            in_specs=[
                pl.BlockSpec((tile_rows, features), lambda i: (i, 0)),
                pl.BlockSpec((1, features), lambda i: (0, 0)),
                pl.BlockSpec((1, features), lambda i: (0, 0)),
            ],
            out_specs=pl.BlockSpec((tile_rows, features), lambda i: (i, 0)),
        ),
        compiler_params=pltpu.CompilerParams(
            dimension_semantics=("parallel",),   # row grid shards across TCs
            vmem_limit_bytes=32 << 20,           # raise v5e's 16 MiB default
        ),
        cost_estimate=cost,
    )(x2, gamma2, beta2)

    return out.reshape(orig_shape)


if __name__ == "__main__":
    key = jax.random.PRNGKey(0)
    batch, seq, features = 2, 8, 32

    x = jax.random.normal(key, (batch, seq, features), dtype=jnp.float32)

    # deterministic parameter init, matching nn.Parameter(torch.ones/zeros)
    gamma = jnp.ones((features,), dtype=jnp.float32)
    beta = jnp.zeros((features,), dtype=jnp.float32)

    out = layer_norm(x, gamma, beta, eps=1e-6)
    out = jax.block_until_ready(out)

    # reference check in plain JAX (unbiased std, eps added to std)
    mean = jnp.mean(x, axis=-1, keepdims=True)
    std = jnp.std(x, axis=-1, keepdims=True, ddof=1)
    ref = gamma * ((x - mean) / (std + 1e-6)) + beta
    assert out.shape == x.shape
    assert jnp.max(jnp.abs(out - ref)) < 1e-4

    print("KERNEL_OK")
</pallas_src>

<mosaic_0001>
module attributes {stable_mosaic.version = 11 : i64} {
  func.func @_layernorm_kernel(%arg0: i32, %arg1: memref<16x32xf32, #tpu.memory_space<vmem>>, %arg2: memref<1x32xf32, #tpu.memory_space<vmem>>, %arg3: memref<1x32xf32, #tpu.memory_space<vmem>>, %arg4: memref<16x32xf32, #tpu.memory_space<vmem>>) attributes {dimension_semantics = [#tpu.dimension_semantics<parallel>], iteration_bounds = array<i64: 1>, scalar_prefetch = 0 : i64, scratch_operands = 0 : i64, tpu.core_type = #tpu.core_type<tc>, window_params = [{transform_indices = @transform_0, window_bounds = array<i64: 16, 32>}, {pipeline_mode = #tpu.pipeline_mode<synchronous>, transform_indices = @transform_1, window_bounds = array<i64: 1, 32>}, {pipeline_mode = #tpu.pipeline_mode<synchronous>, transform_indices = @transform_2, window_bounds = array<i64: 1, 32>}, {transform_indices = @transform_3, window_bounds = array<i64: 16, 32>}]} {
    %c0 = arith.constant 0 : index
    %c0_0 = arith.constant 0 : index
    %0 = vector.load %arg1[%c0, %c0_0] : memref<16x32xf32, #tpu.memory_space<vmem>>, vector<16x32xf32>
    %cst = arith.constant dense<0.000000e+00> : vector<16xf32>
    %1 = vector.multi_reduction <add>, %0, %cst [1] : vector<16x32xf32> to vector<16xf32>
    %2 = vector.shape_cast %1 : vector<16xf32> to vector<16x1xf32>
    %3 = arith.mulf %0, %0 : vector<16x32xf32>
    %cst_1 = arith.constant dense<0.000000e+00> : vector<16xf32>
    %4 = vector.multi_reduction <add>, %3, %cst_1 [1] : vector<16x32xf32> to vector<16xf32>
    %5 = vector.shape_cast %4 : vector<16xf32> to vector<16x1xf32>
    %cst_2 = arith.constant 3.200000e+01 : f32
    %6 = vector.broadcast %cst_2 : f32 to vector<16x1xf32>
    %7 = arith.divf %2, %6 : vector<16x1xf32>
    %8 = arith.mulf %2, %7 : vector<16x1xf32>
    %9 = arith.subf %5, %8 : vector<16x1xf32>
    %cst_3 = arith.constant 3.100000e+01 : f32
    %10 = vector.broadcast %cst_3 : f32 to vector<16x1xf32>
    %11 = arith.divf %9, %10 : vector<16x1xf32>
    %cst_4 = arith.constant 0.000000e+00 : f32
    %12 = vector.broadcast %cst_4 : f32 to vector<16x1xf32>
    %13 = arith.maximumf %11, %12 : vector<16x1xf32>
    %14 = math.sqrt %13 : vector<16x1xf32>
    %cst_5 = arith.constant 9.99999997E-7 : f32
    %15 = vector.broadcast %cst_5 : f32 to vector<16x1xf32>
    %16 = arith.addf %14, %15 : vector<16x1xf32>
    %17 = tpu.reciprocal %16 : vector<16x1xf32> -> vector<16x1xf32>
    %c0_6 = arith.constant 0 : index
    %c0_7 = arith.constant 0 : index
    %18 = vector.load %arg2[%c0_6, %c0_7] : memref<1x32xf32, #tpu.memory_space<vmem>>, vector<1x32xf32>
    %c0_8 = arith.constant 0 : index
    %c0_9 = arith.constant 0 : index
    %19 = vector.load %arg3[%c0_8, %c0_9] : memref<1x32xf32, #tpu.memory_space<vmem>>, vector<1x32xf32>
    %20 = vector.broadcast %7 : vector<16x1xf32> to vector<16x32xf32>
    %21 = arith.subf %0, %20 : vector<16x32xf32>
    %22 = vector.broadcast %17 : vector<16x1xf32> to vector<16x32xf32>
    %23 = arith.mulf %21, %22 : vector<16x32xf32>
    %24 = vector.broadcast %18 : vector<1x32xf32> to vector<16x32xf32>
    %25 = arith.mulf %24, %23 : vector<16x32xf32>
    %26 = vector.broadcast %19 : vector<1x32xf32> to vector<16x32xf32>
    %27 = arith.addf %25, %26 : vector<16x32xf32>
    %c0_10 = arith.constant 0 : index
    %c0_11 = arith.constant 0 : index
    %28 = vector.load %arg4[%c0_10, %c0_11] : memref<16x32xf32, #tpu.memory_space<vmem>>, vector<16x32xf32>
    tpu.vector_store %arg4[%c0_10, %c0_11], %27 {strides = array<i32>} : memref<16x32xf32, #tpu.memory_space<vmem>>, vector<16x32xf32>,
    return
  }
  func.func @transform_0(%arg0: i32) -> (i32, i32) {
    %c0_i32 = arith.constant 0 : i32
    %c0_i32_0 = arith.constant 0 : i32
    return %arg0, %c0_i32 : i32, i32
  }
  func.func @transform_1(%arg0: i32) -> (i32, i32) {
    %c0_i32 = arith.constant 0 : i32
    %c0_i32_0 = arith.constant 0 : i32
    %c0_i32_1 = arith.constant 0 : i32
    return %c0_i32, %c0_i32_0 : i32, i32
  }
  func.func @transform_2(%arg0: i32) -> (i32, i32) {
    %c0_i32 = arith.constant 0 : i32
    %c0_i32_0 = arith.constant 0 : i32
    %c0_i32_1 = arith.constant 0 : i32
    return %c0_i32, %c0_i32_0 : i32, i32
  }
  func.func @transform_3(%arg0: i32) -> (i32, i32) {
    %c0_i32 = arith.constant 0 : i32
    %c0_i32_0 = arith.constant 0 : i32
    return %arg0, %c0_i32 : i32, i32
  }
}

</mosaic_0001>

<bundles_post_ra>
// kernel: tpu_custom_call.1
= control target key start
LH: loop header
LB: loop body
LE: loop exit
PB: predicated region body
PF: predicated region fallthrough
CT: control target
= control target key end

     0   :  { %8 = vsyncpa [#allocation3], 0  ;;  %s245_s0 = inlined_call_operand.hbm [shape: f32[16,32], index: 0, kind: input, shape index: {}]   ;;  %s246_s1 = inlined_call_operand.vmem [shape: f32[1,32], index: 1, kind: input, shape index: {}]   ;;  %s247_s2 = inlined_call_operand.vmem [shape: f32[1,32], index: 2, kind: input, shape index: {}]   ;;  %s248_s3 = inlined_call_operand.hbm [shape: f32[16,32], index: 3, kind: output, shape index: {}]  }
   0x1   :  { %9 = vsyncpa [#allocation4], 0  ;;  %s179_s12 = smov [#allocation2]   ;;  %s131_s16 = scalar_lea.hbm %s245_s0, 256 }
   0x2   :  { %s15_s13 = sshll.u32 %s179_s12, 4  ;;  %p132_p0 = scmp.ne.s32.totalorder %s245_s0, %s131_s16  ;;  %s16_s13 = int_to_ptr.vmem [resolvable:$true] %s15_s13 }
   0x3   :  { %p135_p1 = scmp.lt.u32.totalorder %s131_s16, %s245_s0 }
   0x5   :  { %p137_p2 = pnand %p135_p1, %p132_p0 }
   0x7   :  { %140 = shalt.err (!%p137_p2)
}
   0x8   :  { %s141_s21 = scalar_lea.vmem %s16_s13, 256  ;;  %p146_p4 = scmp.lt.s32.totalorder %s16_s13, %s16_s13 }
   0x9   :  { %p142_p3 = scmp.ne.s32.totalorder %s16_s13, %s141_s21  ;;  %p147_p5 = scmp.lt.s32.totalorder %s141_s21, %s141_s21 }
   0xb   :  { %p148_p6 = por %p147_p5, %p146_p4 }
   0xd   :  { %p149_p7 = pnand %p148_p6, %p142_p3 }
   0xf   :  { %152 = shalt.err (!%p149_p7)
}
  0x10   :  { %s180_s22 = smov 128   ;;  %s181_s23 = smov 8  }
  0x11   :  { %21 = dma.hbm_to_vmem [thread:$0]  %s245_s0, 256, %s16_s13, [#allocation3], %s180_s22, %s180_s22, %s181_s23  }
  0x12   :  { %175 = dma.done.wait [#allocation3], 256  }
  0x13   :  { %176 = vsyncadd [#allocation3], 4294967040  ;;  %vm31_vm0 = vcmask 261120   ;;  %v29_v0 = vld [vmem:[#allocation2] sm:$0xff]  ;;  %v30_v1 = vld [vmem:[#allocation2 + $0x8] sm:$0xff]  ;;  %s182_s29 = smov [#allocation5]  }
  0x14   :  { %v32_v2 = vsel %vm31_vm0, %v29_v0, 0.0  ;;  %v38_v3 = vmul.f32 %v29_v0, %v29_v0  ;;  %v39_v4 = vmul.f32 %v30_v1, %v30_v1  ;;  %v35_v6 = vsel %vm31_vm0, %v30_v1, 0.0  ;;  %v117_v36 = vld [vmem:[%s246_s1] ss:$0 sm:$0xff]  ;;  %s105_s30 = sshll.u32 %s182_s29, 4  ;;  %s106_s30 = int_to_ptr.vmem [resolvable:$true] %s105_s30 }
  0x15   :  { %33 = vadd.xlane.f32.xlu0 %v32_v2  ;;  %v118_v38 = vld [vmem:[%s247_s2] ss:$0 sm:$0xff]  ;;  %s153_s1 = scalar_lea.vmem %s106_s30, 256  ;;  %p158_p9 = scmp.lt.s32.totalorder %s106_s30, %s106_s30 }
  0x16   :  { %v40_v5 = vsel %vm31_vm0, %v38_v3, 0.0  ;;  %v43_v7 = vsel %vm31_vm0, %v39_v4, 0.0  ;;  %p154_p8 = scmp.ne.s32.totalorder %s106_s30, %s153_s1  ;;  %p159_p10 = scmp.lt.s32.totalorder %s153_s1, %s153_s1 }
  0x17   :  { %41 = vadd.xlane.f32.xlu1 %v40_v5 }
  0x18   :  { %p160_p11 = por %p159_p10, %p158_p9 }
  0x19   :  { %36 = vadd.xlane.f32.xlu0 %v35_v6 }
  0x1a   :  { %p161_p12 = pnand %p160_p11, %p154_p8 }
  0x1b   :  { %44 = vadd.xlane.f32.xlu1 %v43_v7 }
  0xa2   :  { %v34_v8 = vpop.xlane.xlu0 %33 }
  0xa3   :  { %v47_v9 = vmul.f32 0.03125, %v34_v8 }
  0xa4   :  { %v42_v10 = vpop.xlane.xlu1 %41 }
  0xa5   :  { %v49_v11 = vmul.f32 %v47_v9, %v34_v8  ;;  %v78_v34 = vsub.f32 %v29_v0, %v47_v9 }
  0xa6   :  { %v37_v12 = vpop.xlane.xlu0 %36 }
  0xa7   :  { %v51_v13 = vsub.f32 %v42_v10, %v49_v11  ;;  %v48_v14 = vmul.f32 0.03125, %v37_v12 }
  0xa8   :  { %v45_v15 = vpop.xlane.xlu1 %44 }
  0xa9   :  { %v54_v16 = vmul.f32 0.032258064, %v51_v13  ;;  %v50_v17 = vmul.f32 %v48_v14, %v37_v12  ;;  %v79_v40 = vsub.f32 %v30_v1, %v48_v14 }
  0xab   :  { %v56_v18 = vmax.f32 %v54_v16, 0.0  ;;  %v52_v19 = vsub.f32 %v45_v15, %v50_v17 }
  0xad   :  { %123 = vrsqrt.f32 %v56_v18  ;;  %v55_v20 = vmul.f32 0.032258064, %v52_v19  ;;  %vm60_vm1 = vcmp.eq.f32.partialorder %v56_v18, inf  ;;  %v63_v24 = vand.u32 2147483648, %v56_v18 }
  0xae   :  { %vm62_vm2 = vcmp.eq.f32.partialorder %v56_v18, 0.0 }
  0xaf   :  { %v57_v21 = vmax.f32 %v55_v20, 0.0 }
  0xb1   :  { %125 = vrsqrt.f32 %v57_v21  ;;  %vm67_vm3 = vcmp.eq.f32.partialorder %v57_v21, inf  ;;  %v70_v30 = vand.u32 2147483648, %v57_v21  ;;  %vm69_vm4 = vcmp.eq.f32.partialorder %v57_v21, 0.0 }
  0xb7   :  { %v124_v22 = vpop.eup %123 }
  0xb8   :  { %v59_v23 = vmul.f32 %v124_v22, %v56_v18 }
  0xba   :  { %v61_v25 = vsel %vm60_vm1, %v56_v18, %v59_v23 }
  0xbb   :  { %v64_v26 = vsel %vm62_vm2, %v63_v24, %v61_v25  ;;  %v126_v27 = vpop.eup %125 }
  0xbc   :  { %v72_v28 = vadd.f32 1e-06, %v64_v26  ;;  %v66_v29 = vmul.f32 %v126_v27, %v57_v21 }
  0xbe   :  { %127 = vrcp.f32 %v72_v28  ;;  %v68_v31 = vsel %vm67_vm3, %v57_v21, %v66_v29 }
  0xbf   :  { %v71_v32 = vsel %vm69_vm4, %v70_v30, %v68_v31 }
  0xc0   :  { %v73_v33 = vadd.f32 1e-06, %v71_v32 }
  0xc2   :  { %129 = vrcp.f32 %v73_v33 }
  0xc8   :  { %v128_v35 = vpop.eup %127 }
  0xc9   :  { %v80_v37 = vmul.f32 %v128_v35, %v78_v34 }
  0xcb   :  { %v88_v39 = vmul.f32 %v117_v36, %v80_v37 }
  0xcc   :  { %v130_v41 = vpop.eup %129 }
  0xcd   :  { %v96_v42 = vadd.f32 %v118_v38, %v88_v39  ;;  %v81_v43 = vmul.f32 %v130_v41, %v79_v40 }
  0xcf   :  { %98 = vst.msk [vmem:[#allocation5] sm:$0xff] %vm31_vm0, %v96_v42  ;;  %v89_v44 = vmul.f32 %v117_v36, %v81_v43 }
  0xd1   :  { %v97_v45 = vadd.f32 %v118_v38, %v89_v44 }
  0xd3   :  { %99 = vst.msk [vmem:[#allocation5 + $0x8] sm:$0xff] %vm31_vm0, %v97_v45 }
  0xd4   :  { %164 = shalt.err (!%p161_p12)
}
  0xd5   :  { %s165_s5 = scalar_lea.hbm %s248_s3, 256 }
  0xd6   :  { %p166_p13 = scmp.ne.s32.totalorder %s248_s3, %s165_s5  ;;  %p169_p0 = scmp.lt.u32.totalorder %s165_s5, %s248_s3 }
  0xd8   :  { %p171_p1 = pnand %p169_p0, %p166_p13 }
  0xda   :  { %174 = shalt.err (!%p171_p1)
}
  0xdb   :  { %111 = dma.vmem_to_hbm [thread:$0]  %s106_s30, 256, %s248_s3, [#allocation4], %s180_s22, %s180_s22, %s181_s23  }
  0xdc   :  { %177 = dma.done.wait [#allocation4], 256  }
  0xdd   :  { %178 = vsyncadd [#allocation4], 4294967040 }
  0xde   :  { %115 = vsyncpa [#allocation3], 1 }
  0xdf   :  { %116 = vsyncpa [#allocation4], 1 }

</bundles_post_ra>
